<compile_context>
chip_gen: v6e
topology: v6e:2x2x1
jax: 0.10.0
libtpu: 0.0.40
codegen_flags: <defaults>
</compile_context>

<pallas_src>
import jax
import jax.numpy as jnp
from jax.experimental import pallas as pl
from jax.experimental.pallas import tpu as pltpu


def _round_up(v, m):
    return ((v + m - 1) // m) * m


def _final_layer_kernel(x_ref, w_ref, b_ref, o_ref):
    # x_ref: (1, TN, H)     tokens for this (batch, token-tile)
    # w_ref: (1, H, O_pad)  per-batch modulate-folded weight, bf16
    # b_ref: (1, 1, O_pad)  per-batch folded bias (shift @ W + b), f32
    # o_ref: (1, TN, O_pad)
    x = x_ref[0].astype(jnp.float32)                     # (TN, H)

    # LayerNorm over the hidden dim, no affine, eps=1e-6, biased variance.
    # Two-pass statistics (numerically robust; hidden under DMA anyway).
    mean = jnp.mean(x, axis=-1, keepdims=True)
    xc = x - mean
    var = jnp.mean(xc * xc, axis=-1, keepdims=True)
    xn = xc * jax.lax.rsqrt(var + 1e-6)                  # (TN, H), f32

    # Modulate is pre-folded (per batch, in the wrapper):
    #   out = xn @ (W * (1+scale))  +  (shift @ W + b)
    out = jnp.dot(xn.astype(jnp.bfloat16), w_ref[0],
                  preferred_element_type=jnp.float32)    # (TN, O_pad), f32 acc
    o_ref[0] = (out + b_ref[0].astype(jnp.float32)).astype(o_ref.dtype)


def encoder_final_layer(x, y, scale_shift_table, w, b, *,
                        tn_max=1024, out_dtype=None, return_padded=False):
    """x: (B, N, H), y: (B, H), scale_shift_table: (2, H), w: (H, O), b: (O,)."""
    B, N, H = x.shape
    O = w.shape[1]
    out_dtype = jnp.dtype(x.dtype if out_dtype is None else out_dtype)
    O_pad = _round_up(O, 128)                            # lane-dense output width

    # --- per-batch fold of t2i_modulate into the linear layer (tiny, B*H*O) ---
    f32 = jnp.float32
    ss = scale_shift_table.astype(f32)[None] + y.astype(f32)[:, None]     # (B, 2, H)
    shift, scale = ss[:, 0, :], ss[:, 1, :]                               # (B, H)
    w32 = w.astype(f32)                                                   # (H, O)
    w_eff = ((1.0 + scale)[:, :, None] * w32[None]).astype(jnp.bfloat16)  # (B, H, O)
    bias_eff = jnp.einsum("bh,ho->bo", shift, w32,
                          preferred_element_type=f32) + b.astype(f32)[None]
    if O_pad != O:
        w_eff = jnp.pad(w_eff, ((0, 0), (0, 0), (0, O_pad - O)))
        bias_eff = jnp.pad(bias_eff, ((0, 0), (0, O_pad - O)))
    bias_eff = bias_eff.reshape(B, 1, O_pad)

    # --- token tile sizing (no wrapper padding of x; ragged last block OK) ---
    TN = _round_up(min(tn_max, _round_up(N, 8)), 8)

    # Generation-aware VMEM budget (v7x: 64 MiB physical, v5e/v6e: 128 MiB).
    try:
        vmem_cap = pltpu.get_tpu_info().vmem_capacity_bytes
    except Exception:  # pragma: no cover - conservative fallback
        vmem_cap = 64 * 1024 * 1024
    vmem_budget = int(vmem_cap * 3 // 4)

    def _vmem_estimate(tn):
        x_buf = 2 * tn * H * x.dtype.itemsize            # double-buffered input
        w_buf = 2 * H * O_pad * 2                        # bf16 weight, 2-buf
        b_buf = 2 * 8 * O_pad * 4                        # bias, 2-buf (padded rows)
        o_buf = 2 * tn * O_pad * out_dtype.itemsize      # double-buffered output
        temps = 4 * tn * H * 4                           # f32 LN temporaries
        return x_buf + w_buf + b_buf + o_buf + temps

    while TN > 8 and _vmem_estimate(TN) > vmem_budget:
        TN = _round_up(TN // 2, 8)

    grid = (B, pl.cdiv(N, TN))

    out = pl.pallas_call(
        _final_layer_kernel,
        out_shape=jax.ShapeDtypeStruct((B, N, O_pad), out_dtype),
        grid_spec=pltpu.PrefetchScalarGridSpec(
            num_scalar_prefetch=0,
            grid=grid,
            in_specs=[
                pl.BlockSpec((1, TN, H), lambda bi, ni: (bi, ni, 0)),     # x
                pl.BlockSpec((1, H, O_pad), lambda bi, ni: (bi, 0, 0)),   # w_eff
                pl.BlockSpec((1, 1, O_pad), lambda bi, ni: (bi, 0, 0)),   # bias_eff
            ],
            out_specs=pl.BlockSpec((1, TN, O_pad), lambda bi, ni: (bi, ni, 0)),
        ),
        compiler_params=pltpu.CompilerParams(
            dimension_semantics=("parallel", "parallel"),
            vmem_limit_bytes=vmem_budget,
        ),
    )(x, w_eff, bias_eff)

    if return_padded:
        # Consumer (unpatchify reshape) can fold the :O slice into its reshape.
        return out
    return out[..., :O]


def _reference(x, y, scale_shift_table, w, b):
    # Pure-JAX f32 reference mirroring the PyTorch forward.
    ss = scale_shift_table[None] + y[:, None]            # (B, 2, H)
    shift = ss[:, 0:1, :]
    scale = ss[:, 1:2, :]
    mean = jnp.mean(x, axis=-1, keepdims=True)
    var = jnp.mean(jnp.square(x - mean), axis=-1, keepdims=True)
    xn = (x - mean) * jax.lax.rsqrt(var + 1e-6)
    xm = xn * (1.0 + scale) + shift
    return jnp.einsum("bnh,ho->bno", xm, w) + b[None, None, :]


if __name__ == "__main__":
    # Small shapes consistent with the module.
    B, N = 2, 8
    hidden_size = 32
    patch_size = 2
    out_channels = 4
    O = patch_size * patch_size * out_channels  # 16

    key = jax.random.PRNGKey(0)
    kx, ky, kt, kw, kb = jax.random.split(key, 5)

    x = jax.random.normal(kx, (B, N, hidden_size), dtype=jnp.float32)
    y = jax.random.normal(ky, (B, hidden_size), dtype=jnp.float32)

    # Deterministic parameter init (shapes match the PyTorch __init__).
    scale_shift_table = (jax.random.normal(kt, (2, hidden_size), dtype=jnp.float32)
                         / hidden_size ** 0.5)
    # nn.Linear(hidden_size, O): torch weight is (O, H); store transposed (H, O).
    w = jax.random.normal(kw, (hidden_size, O), dtype=jnp.float32) * 0.02
    b = jax.random.normal(kb, (O,), dtype=jnp.float32) * 0.02

    out = encoder_final_layer(x, y, scale_shift_table, w, b)
    out = jax.block_until_ready(out)
    ref = _reference(x, y, scale_shift_table, w, b)
    assert out.shape == (B, N, O)
    # bf16 MXU operands => slightly looser tolerance than pure-f32.
    assert jnp.allclose(out, ref, atol=2e-2, rtol=2e-2)

    # Exercise the ragged-last-block path (N not a multiple of the token tile).
    N2 = 20
    x2 = jax.random.normal(kx, (B, N2, hidden_size), dtype=jnp.float32)
    out2 = encoder_final_layer(x2, y, scale_shift_table, w, b, tn_max=8)
    out2 = jax.block_until_ready(out2)
    ref2 = _reference(x2, y, scale_shift_table, w, b)
    assert out2.shape == (B, N2, O)
    assert jnp.allclose(out2, ref2, atol=2e-2, rtol=2e-2)

    print("KERNEL_OK")
</pallas_src>

<mosaic_0001>
module attributes {stable_mosaic.version = 11 : i64} {
  func.func @_final_layer_kernel(%arg0: i32, %arg1: i32, %arg2: memref<1x8x32xf32, #tpu.memory_space<vmem>>, %arg3: memref<1x32x128xbf16, #tpu.memory_space<vmem>>, %arg4: memref<1x1x128xf32, #tpu.memory_space<vmem>>, %arg5: memref<1x8x128xf32, #tpu.memory_space<vmem>>) attributes {dimension_semantics = [#tpu.dimension_semantics<parallel>, #tpu.dimension_semantics<parallel>], iteration_bounds = array<i64: 2, 1>, scalar_prefetch = 0 : i64, scratch_operands = 0 : i64, tpu.core_type = #tpu.core_type<tc>, window_params = [{transform_indices = @transform_0, window_bounds = array<i64: 1, 8, 32>}, {transform_indices = @transform_1, window_bounds = array<i64: 1, 32, 128>}, {transform_indices = @transform_2, window_bounds = array<i64: 1, 1, 128>}, {transform_indices = @transform_3, window_bounds = array<i64: 1, 8, 128>}]} {
    %c0 = arith.constant 0 : index
    %c0_0 = arith.constant 0 : index
    %c0_1 = arith.constant 0 : index
    %0 = vector.load %arg2[%c0, %c0_0, %c0_1] : memref<1x8x32xf32, #tpu.memory_space<vmem>>, vector<1x8x32xf32>
    %1 = vector.shape_cast %0 : vector<1x8x32xf32> to vector<8x32xf32>
    %cst = arith.constant dense<0.000000e+00> : vector<8xf32>
    %2 = vector.multi_reduction <add>, %1, %cst [1] : vector<8x32xf32> to vector<8xf32>
    %3 = vector.shape_cast %2 : vector<8xf32> to vector<8x1xf32>
    %cst_2 = arith.constant 3.200000e+01 : f32
    %4 = vector.broadcast %cst_2 : f32 to vector<8x1xf32>
    %5 = arith.divf %3, %4 : vector<8x1xf32>
    %6 = vector.broadcast %5 : vector<8x1xf32> to vector<8x32xf32>
    %7 = arith.subf %1, %6 : vector<8x32xf32>
    %8 = arith.mulf %7, %7 : vector<8x32xf32>
    %cst_3 = arith.constant dense<0.000000e+00> : vector<8xf32>
    %9 = vector.multi_reduction <add>, %8, %cst_3 [1] : vector<8x32xf32> to vector<8xf32>
    %10 = vector.shape_cast %9 : vector<8xf32> to vector<8x1xf32>
    %cst_4 = arith.constant 3.200000e+01 : f32
    %11 = vector.broadcast %cst_4 : f32 to vector<8x1xf32>
    %12 = arith.divf %10, %11 : vector<8x1xf32>
    %cst_5 = arith.constant 9.99999997E-7 : f32
    %13 = vector.broadcast %cst_5 : f32 to vector<8x1xf32>
    %14 = arith.addf %12, %13 : vector<8x1xf32>
    %15 = math.rsqrt %14 : vector<8x1xf32>
    %16 = vector.broadcast %15 : vector<8x1xf32> to vector<8x32xf32>
    %17 = arith.mulf %7, %16 : vector<8x32xf32>
    %18 = arith.truncf %17 : vector<8x32xf32> to vector<8x32xbf16>
    %c0_6 = arith.constant 0 : index
    %c0_7 = arith.constant 0 : index
    %c0_8 = arith.constant 0 : index
    %19 = vector.load %arg3[%c0_6, %c0_7, %c0_8] : memref<1x32x128xbf16, #tpu.memory_space<vmem>>, vector<1x32x128xbf16>
    %20 = vector.shape_cast %19 : vector<1x32x128xbf16> to vector<32x128xbf16>
    %cst_9 = arith.constant dense<0.000000e+00> : vector<8x128xf32>
    %21 = tpu.matmul %18, %20, %cst_9 {dimension_numbers = #tpu.dot_dimension_numbers<[1], [0], [0], [1], [0, 0, 1, 1], [], []>} : vector<8x32xbf16>, vector<32x128xbf16>, vector<8x128xf32> -> vector<8x128xf32>
    %c0_10 = arith.constant 0 : index
    %c0_11 = arith.constant 0 : index
    %c0_12 = arith.constant 0 : index
    %22 = vector.load %arg4[%c0_10, %c0_11, %c0_12] : memref<1x1x128xf32, #tpu.memory_space<vmem>>, vector<1x1x128xf32>
    %23 = vector.shape_cast %22 : vector<1x1x128xf32> to vector<1x128xf32>
    %24 = vector.broadcast %23 : vector<1x128xf32> to vector<8x128xf32>
    %25 = arith.addf %21, %24 : vector<8x128xf32>
    %c0_13 = arith.constant 0 : index
    %c0_14 = arith.constant 0 : index
    %c0_15 = arith.constant 0 : index
    %26 = vector.load %arg5[%c0_13, %c0_14, %c0_15] : memref<1x8x128xf32, #tpu.memory_space<vmem>>, vector<1x8x128xf32>
    %27 = vector.shape_cast %26 : vector<1x8x128xf32> to vector<8x128xf32>
    %28 = vector.shape_cast %25 : vector<8x128xf32> to vector<1x8x128xf32>
    tpu.vector_store %arg5[%c0_13, %c0_14, %c0_15], %28 {strides = array<i32>} : memref<1x8x128xf32, #tpu.memory_space<vmem>>, vector<1x8x128xf32>,
    return
  }
  func.func @transform_0(%arg0: i32, %arg1: i32) -> (i32, i32, i32) {
    %c0_i32 = arith.constant 0 : i32
    %c0_i32_0 = arith.constant 0 : i32
    return %arg0, %arg1, %c0_i32 : i32, i32, i32
  }
  func.func @transform_1(%arg0: i32, %arg1: i32) -> (i32, i32, i32) {
    %c0_i32 = arith.constant 0 : i32
    %c0_i32_0 = arith.constant 0 : i32
    %c0_i32_1 = arith.constant 0 : i32
    return %arg0, %c0_i32, %c0_i32_0 : i32, i32, i32
  }
  func.func @transform_2(%arg0: i32, %arg1: i32) -> (i32, i32, i32) {
    %c0_i32 = arith.constant 0 : i32
    %c0_i32_0 = arith.constant 0 : i32
    %c0_i32_1 = arith.constant 0 : i32
    return %arg0, %c0_i32, %c0_i32_0 : i32, i32, i32
  }
  func.func @transform_3(%arg0: i32, %arg1: i32) -> (i32, i32, i32) {
    %c0_i32 = arith.constant 0 : i32
    %c0_i32_0 = arith.constant 0 : i32
    return %arg0, %arg1, %c0_i32 : i32, i32, i32
  }
}

</mosaic_0001>

<bundles_post_ra>
// kernel: tpu_custom_call.1
= control target key start
LH: loop header
LB: loop body
LE: loop exit
PB: predicated region body
PF: predicated region fallthrough
CT: control target
= control target key end

     0   :  { %8 = vsyncpa [#allocation3], 0  ;;  %s934_s0 = inlined_call_operand.hbm [shape: f32[2,8,32], index: 0, kind: input, shape index: {}]   ;;  %s935_s1 = inlined_call_operand.hbm [shape: bf16[2,32,128], index: 1, kind: input, shape index: {}]   ;;  %s936_s2 = inlined_call_operand.vmem [shape: f32[2,1,128], index: 2, kind: input, shape index: {}]   ;;  %s937_s3 = inlined_call_operand.hbm [shape: f32[2,8,128], index: 3, kind: output, shape index: {}]  }
   0x1   :  { %10 = vsyncpa [#allocation3 + $0x1], 0 }
   0x2   :  { %11 = vsyncpa [#allocation6], 0 }
   0x3   :  { %13 = vsyncpa [#allocation6 + $0x1], 0 }
   0x4   :  { %14 = vsyncpa [#allocation4], 0 }
   0x5   :  { %16 = vsyncpa [#allocation4 + $0x1], 0  ;;  %s746_s12 = smov 0   ;;  %s748_s13 = smov 0  }
   0x6   :  { %s750_s14 = smov 0   ;;  %s752_s15 = smov 0  }
   0x7   :  { %s754_s16 = smov 0   ;;  %s756_s17 = smov 0  }
   0x8 LB: > { %s469_s18 = sadd.s32 4294967295, %s717_s17   ;;  %s470_s19 = sadd.s32 4294967294, %s717_s17   ;;  %s717_s17 = sphi %s756_s17, %s22_s17   ;;  %s713_s16 = sphi %s754_s16, %s949_s16   ;;  %s709_s15 = sphi %s752_s15, %s948_s15   ;;  %s705_s14 = sphi %s750_s14, %s947_s14   ;;  %s701_s13 = sphi %s748_s13, %s946_s13   ;;  %s697_s12 = sphi %s746_s12, %s945_s12  }
   0x9   : > { %s34_s20 = sadd.s32 1, %s713_s16  ;;  %s43_s21 = sadd.s32 1, %s705_s14 }
   0xa   : > { %p36_p0 = scmp.ge.s32.totalorder %s34_s20, 2  ;;  %p50_p1 = scmp.ne.s32.totalorder %s705_s14, %s701_s13 }
   0xb   : > { %p51_p2 = scmp.eq.s32.totalorder %s717_s17, 0  ;;  %p56_p3 = scmp.ne.s32.totalorder %s701_s13, %s697_s12 }
   0xc   : > { %s951_s20 = smov (%p36_p0, %s34_s20), 0  ;;  %p57_p5 = scmp.eq.s32.totalorder %s469_s18, 0 }
   0xd   : > { %p787_p4 = por %p51_p2, %p50_p1  ;;  %s38_s23 = ssub.s32 %s713_s16, %s951_s20 }
   0xe   : > { %p134_p6 = scmp.eq.s32.totalorder %s469_s18, 1  ;;  %p41_p7 = scmp.eq.s32.totalorder %s38_s23, 0 }
   0xf   : > { %p793_p8 = por %p57_p5, %p56_p3  ;;  %p140_p10 = scmp.eq.s32.totalorder %s470_s19, 1 }
  0x10   : > { %p797_p9 = por %p134_p6, %p50_p1  ;;  %p519_p13 = scmp.lt.s32.totalorder %s717_s17, 2 }
  0x11   : > { %s802_s26 = scalar_select %p41_p7, %s705_s14, %s43_s21  }
  0x12   : > { %p804_p11 = por %p140_p10, %p56_p3  ;;  %s811_s28 = sand.u32 1, %s705_s14  }
  0x13   : > { %s473_s29 = sshll.u32 %s811_s28, 3  ;;  %s474_s30 = sshll.u32 %s713_s16, 7 }
  0x14   : > { %s170_s6 = scalar_lea.hbm %s934_s0, %s474_s30  ;;  %s164_s7 = scalar_lea.vmem [#allocation2], %s473_s29 }
  0x15   : > { %s172_s8 = sshll.u32 %s164_s7, 4  ;;  %p820_p0 = pnand %p519_p13, %p787_p4  ;;  %s173_s8 = int_to_ptr.vmem [resolvable:$true] %s172_s8 }
  0x16   : > { %p478_p1 = scmp.ge.s32.totalorder %s717_s17, 1  ;;  %p204_p2 = scmp.lt.s32.totalorder %s717_s17, 3 }
  0x17   : > { %s161_s10 = scalar_lea.sflag [#allocation3], %s811_s28  ;;  %p579_p3 = pneg %p820_p0 }
  0x18   : > { %s590_s11 = scalar_lea.vmem %s173_s8, 128  ;;  %s719_s18 = smov [#allocation2]  }
  0x19   : > { %p591_p5 = scmp.ne.s32.totalorder %s173_s8, %s590_s11  ;;  %s595_s19 = sshll.u32 %s719_s18, 4  ;;  %s596_s19 = int_to_ptr.vmem [resolvable:$false] %s595_s19 }
  0x1a   : > { %s597_s21 = scalar_lea.vmem %s596_s19, 256  ;;  %p598_p4 = scmp.lt.s32.totalorder %s173_s8, %s596_s19 }
  0x1b   : > { %p593_p6 = pnand %p591_p5, %p579_p3  ;;  %p599_p10 = scmp.lt.s32.totalorder %s597_s21, %s590_s11 }
  0x1d   : > { %p594_p7 = pneg %p593_p6  ;;  %p600_p13 = por %p599_p10, %p598_p4 }
  0x1f   : > { %p601_p12 = pnand %p600_p13, %p594_p7 }
  0x21   : > { %604 = shalt.err (!%p601_p12)
}
  0x22   : > { %511 = dma.hbm_to_vmem [thread:$0]  (!%p820_p0), %s170_s6, 128, %s173_s8, %s161_s10  }
  0x23   : > { %p838_p5 = pnand %p478_p1, %p204_p2  ;;  %s475_s23 = sshll.u32 %s811_s28, 4 }
  0x24   : > { %s490_s29 = sshll.u32 %s713_s16, 8  ;;  %s183_s7 = scalar_lea.vmem [#allocation5], %s475_s23 }
  0x25   : > { %s189_s5 = scalar_lea.hbm %s935_s1, %s490_s29  ;;  %s190_s11 = sshll.u32 %s183_s7, 4  ;;  %s191_s11 = int_to_ptr.vmem [resolvable:$true] %s190_s11 }
  0x26   : > { %s180_s18 = scalar_lea.sflag [#allocation6], %s811_s28  ;;  %s618_s19 = scalar_lea.vmem %s191_s11, 256 }
  0x27   : > { %p619_p12 = scmp.ne.s32.totalorder %s191_s11, %s618_s19  ;;  %s720_s6 = smov [#allocation5]  }
  0x28   : > { %s623_s8 = sshll.u32 %s720_s6, 4  ;;  %s624_s8 = int_to_ptr.vmem [resolvable:$false] %s623_s8 }
  0x29   : > { %p621_p6 = pnand %p619_p12, %p579_p3  ;;  %s625_s10 = scalar_lea.vmem %s624_s8, 512 }
  0x2a   : > { %p626_p1 = scmp.lt.s32.totalorder %s191_s11, %s624_s8  ;;  %p627_p2 = scmp.lt.s32.totalorder %s625_s10, %s618_s19 }
  0x2b   : > { %p622_p7 = pneg %p621_p6 }
  0x2c   : > { %p628_p4 = por %p627_p2, %p626_p1 }
  0x2e   : > { %p629_p10 = pnand %p628_p4, %p622_p7 }
  0x30   : > { %632 = shalt.err (!%p629_p10)
}
  0x31   : > { %s721_s21 = smov 64   ;;  %s722_s23 = smov 4  }
  0x32   : > { %514 = dma.hbm_to_vmem [thread:$0]  (!%p820_p0), %s189_s5, 256, %s191_s11, %s180_s18, %s721_s21, %s721_s21, %s722_s23  }
  0x33   : > { %208 = sbr.rel (%p838_p5) target bundleno = 576 (0x240), region = 32  ;;  %s856_s28 = sand.u32 (!%p838_p5), 1, %s701_s13  }
  0x34   : > { %s479_s29 = sshll.u32 (!%p838_p5), %s856_s28, 3  ;;  %s211_s30 = scalar_lea.sflag (!%p838_p5), [#allocation3], %s856_s28 }
  0x35   : > { %s214_s4 = scalar_lea.vmem (!%p838_p5), [#allocation2], %s479_s29 }
  0x38   : > { %684 = dma.done.wait (%p793_p8), %s211_s30, 128  }
  0x39   : > { %686 = vsyncadd (%p793_p8), %s211_s30, 4294967168  ;;  %s480_s9 = sshll.u32 %s856_s28, 4  ;;  %s220_s22 = scalar_lea.sflag [#allocation6], %s856_s28 }
  0x3a   : > { %s223_s5 = scalar_lea.vmem [#allocation5], %s480_s9 }
  0x3b   : > { %688 = dma.done.wait (%p793_p8), %s220_s22, 256  }
  0x3c   : > { %690 = vsyncadd (%p793_p8), %s220_s22, 4294967040  ;;  %vm259_vm0 = vcmask 261120   ;;  %v258_v0 = vld [vmem:[%s214_s4] sm:$0xff]  ;;  %v723_v8 = vmov 0.0   ;;  %vm724_vm1 = vmmov 0   ;;  %v574_v9 = vld [vmem:[%s223_s5] sm:$0xff]  }
  0x3d   : > { %v260_v1 = vsel %vm259_vm0, %v258_v0, 0.0  ;;  %v573_v7 = vld [vmem:[%s223_s5 + $0x8] sm:$0xff]   ;;  %494 = vmatprep.subr.bf16.mxu0 %v723_v8  ;;  %498 = vmatprep.mubr.msk.bf16.mxu0 %vm724_vm1, %v723_v8  ;;  %p254_p8 = scmp.lt.s32.totalorder %s709_s15, 1  ;;  %s487_s19 = sshll.u32 %s709_s15, 7 }
  0x3e   : > { %261 = vadd.xlane.f32.xlu0 %v260_v1  ;;  %495 = vmatpush3.bf16.msra.mxu0 %v573_v7  ;;  %s253_s6 = scalar_lea.vmem [#allocation7], %s479_s29  ;;  %s886_s23 = scalar_lea.hbm %s937_s3, %s487_s19 }
  0x3f   : > { %496 = vmatprep.subr.bf16.mxu0 %v723_v8  ;;  %s255_s24 = scalar_select %p254_p8, %s709_s15, 1 }
  0x40   : > { %s357_s8 = sshll.u32 %s253_s6, 4  ;;  %s343_s30 = scalar_lea.sflag [#allocation4], %s856_s28  ;;  %s888_s8 = int_to_ptr.vmem [resolvable:$true] %s357_s8 }
  0x41   : > { %s256_s18 = scalar_lea.vmem %s936_s2, %s255_s24  ;;  %s633_s15 = scalar_lea.vmem %s888_s8, 128 }
  0x42   : > { %497 = vmatpush3.bf16.msra.mxu0 %v574_v9  ;;  %v482_v16 = vld [vmem:[%s256_s18] ss:$0 sm:$0xff]  ;;  %p634_p0 = scmp.ne.s32.totalorder %s888_s8, %s633_s15  ;;  %s725_s29 = smov [#allocation7]  }
  0x43   : > { %s637_s4 = sshll.u32 %s725_s29, 4  ;;  %s638_s4 = int_to_ptr.vmem [resolvable:$false] %s637_s4 }
  0x44   : > { %p635_p3 = pnand %p634_p0, %p797_p9  ;;  %s639_s9 = scalar_lea.vmem %s638_s4, 256 }
  0x45   : > { %p640_p5 = scmp.lt.s32.totalorder %s888_s8, %s638_s4  ;;  %p641_p12 = scmp.lt.s32.totalorder %s639_s9, %s633_s15 }
  0x46   : > { %p636_p13 = pneg %p635_p3 }
  0x47   : > { %p642_p6 = por %p641_p12, %p640_p5 }
  0x49   : > { %p643_p7 = pnand %p642_p6, %p636_p13 }
  0xc7   : > { %v262_v2 = vpop.xlane.xlu0 %261 }
  0xc8   : > { %v264_v3 = vmul.f32 0.03125, %v262_v2 }
  0xca   : > { %v265_v4 = vsub.f32 %v258_v0, %v264_v3 }
  0xcc   : > { %v266_v5 = vmul.f32 %v265_v4, %v265_v4 }
  0xce   : > { %v267_v6 = vsel %vm259_vm0, %v266_v5, 0.0 }
  0xcf   : > { %268 = vadd.xlane.f32.xlu0 %v267_v6 }
 0x158   : > { %v269_v10 = vpop.xlane.xlu0 %268 }
 0x159   : > { %v270_v11 = vmul.f32 0.03125, %v269_v10 }
 0x15b   : > { %v271_v12 = vadd.f32 1e-06, %v270_v11 }
 0x15d   : > { %575 = vrsqrt.f32 %v271_v12 }
 0x16a   : > { %v576_v13 = vpop.eup %575 }
 0x16b   : > { %v273_v14 = vmul.f32 %v576_v13, %v265_v4 }
 0x16d   : > { %v274_v15 = vpack.c.bf16 %v273_v14, %v273_v14 }
 0x16f   : > { %499 = vmatmul.mubr.msk.bf16.vlgmr.msra.gmra.mxu0 %vm259_vm0, %v274_v15 }
 0x22f   : > { %v335_v17 = vpop.f32.mrf.mxu0 }
 0x230   : > { %v336_v18 = vadd.f32 %v482_v16, %v335_v17 }
 0x231   : > { %v500_v19 = vpop.f32.mrf.mxu0 }
 0x232   : > { %341 = vst [vmem:[%s253_s6] sm:$0xff] %v336_v18 }
 0x233   : > { %v338_v20 = vpop.f32.mrf.mxu0 }
 0x234   : > { %646 = shalt.err (!%p643_p7)
}
 0x235   : > { %s647_s22 = scalar_lea.hbm %s886_s23, 128  ;;  %s651_s24 = scalar_lea.hbm %s937_s3, 256 }
 0x236   : > { %p648_p1 = scmp.ne.s32.totalorder %s886_s23, %s647_s22  ;;  %p652_p10 = scmp.lt.s32.totalorder %s886_s23, %s937_s3 }
 0x237   : > { %p653_p8 = scmp.lt.s32.totalorder %s651_s24, %s647_s22 }
 0x238   : > { %p649_p2 = pnand %p648_p1, %p797_p9 }
 0x239   : > { %p654_p0 = por %p653_p8, %p652_p10 }
 0x23a   : > { %p650_p4 = pneg %p649_p2 }
 0x23c   : > { %p655_p3 = pnand %p654_p0, %p650_p4 }
 0x23e   : > { %658 = shalt.err (!%p655_p3)
}
 0x23f   : > { %506 = dma.vmem_to_hbm [thread:$0]  (%p797_p9), %s888_s8, 128, %s886_s23, %s343_s30   ;;  %v501_v21 = vpop.f32.mrf.mxu0 }
 0x240 PF: > { %s369_s18 = sand.u32 1, %s697_s12   ;;  %p944_p13 = scmp.ge.s32.totalorder %s717_s17, 2 }
 0x241   : > { %s370_s19 = scalar_lea.sflag [#allocation4], %s369_s18 }
 0x242   : > { %p516_p5 = pnand %p944_p13, %p804_p11 }
 0x244   : > { %p517_p12 = pneg %p516_p5 }
 0x246   : > { %692 = dma.done.wait (%p517_p12), %s370_s19, 128  }
 0x247   : > { %694 = vsyncadd (%p517_p12), %s370_s19, 4294967168  ;;  %s22_s17 = sadd.s32 1, %s717_s17   ;;  %s945_s12 = smov %s701_s13 }
 0x248   : > { %p19_p6 = scmp.ge.s32.totalorder %s22_s17, 4   ;;  %s946_s13 = smov %s705_s14 }
 0x249   : > { %s947_s14 = smov %s802_s26  ;;  %s948_s15 = smov %s713_s16 }
 0x24a   : > { %s949_s16 = smov %s951_s20  ;;  %21 = sbr.rel (!%p19_p6) target bundleno = 8 (0x8), region = 93 }
 0x24f   :  { %375 = vsyncpa [#allocation3], 1 }
 0x250   :  { %377 = vsyncpa [#allocation3 + $0x1], 1 }
 0x251   :  { %378 = vsyncpa [#allocation6], 1 }
 0x252   :  { %380 = vsyncpa [#allocation6 + $0x1], 1 }
 0x253   :  { %381 = vsyncpa [#allocation4], 1 }
 0x254   :  { %383 = vsyncpa [#allocation4 + $0x1], 1 }

</bundles_post_ra>
